<compile_context>
chip_gen: v7x
topology: tpu7x:2x2x1
jax: 0.10.0
libtpu: 0.0.40
codegen_flags: <defaults>
</compile_context>

<pallas_src>
import functools

import jax
import jax.numpy as jnp
from jax import lax
from jax.experimental import pallas as pl
from jax.experimental.pallas import tpu as pltpu

LANE = 128
MAX_ROW_TILE = 512   # (512,128) f32 block = 256 KiB; tile curve saturates here.
NUM_TC = 2           # TensorCores to shard rows over (v7x); serial on v5e/v6e.


def _round_up(x, m):
    return (x + m - 1) // m * m


def _sublane_multiple(dtype):
    # Minimum second-to-last tile dim: (8,128) f32, (16,128) bf16, (32,128) 8-bit.
    return {4: 8, 2: 16, 1: 32}.get(jnp.dtype(dtype).itemsize, 8)


def _tile_losses(pred_ref, target_ref, *, row_tile, n_elems, steps_per_core):
    """Per-box IoU losses in the lane-interleaved [l,r,t,b,...] layout.

    Returns (loss, valid): `loss` holds the per-box loss at lanes with
    lane % 4 == 0 (garbage elsewhere); `valid` masks those lanes and the
    ragged / out-of-range tail (incl. clamped duplicate blocks).
    """
    p = pred_ref[...].astype(jnp.float32)
    t = target_ref[...].astype(jnp.float32)
    m = jnp.minimum(p, t)  # per-coordinate mins, still interleaved

    # x + roll(x, -1): lane%4==0 -> left+right,  lane%4==2 -> top+bottom.
    # (shift LANE-1 == shift -1 for a 128-lane rotation; jnp.roll semantics)
    ps = p + pltpu.roll(p, LANE - 1, 1)
    ts = t + pltpu.roll(t, LANE - 1, 1)
    ms = m + pltpu.roll(m, LANE - 1, 1)

    # y * roll(y, -2): lane%4==0 -> (l+r)*(t+b).
    pred_area = ps * pltpu.roll(ps, LANE - 2, 1)
    target_area = ts * pltpu.roll(ts, LANE - 2, 1)
    area_i = ms * pltpu.roll(ms, LANE - 2, 1)
    area_u = target_area + pred_area - area_i

    # -log((ai+1)/(au+1)) == log(au+1) - log(ai+1): no divide, EUP takes the log.
    loss = jnp.log(area_u + 1.0) - jnp.log(area_i + 1.0)

    blk = pl.program_id(0) * steps_per_core + pl.program_id(1)
    row = lax.broadcasted_iota(jnp.int32, (row_tile, LANE), 0)
    lane = lax.broadcasted_iota(jnp.int32, (row_tile, LANE), 1)
    flat = (blk * row_tile + row) * LANE + lane
    valid = ((lane & 3) == 0) & (flat < n_elems)
    return loss, valid


def _iou_sum_kernel(pred_ref, target_ref, out_ref, acc_ref, *,
                    row_tile, n_elems, steps_per_core):
    i = pl.program_id(1)

    @pl.when(i == 0)
    def _():
        acc_ref[...] = jnp.zeros_like(acc_ref)

    loss, valid = _tile_losses(pred_ref, target_ref, row_tile=row_tile,
                               n_elems=n_elems, steps_per_core=steps_per_core)
    acc_ref[...] += jnp.where(valid, loss, 0.0)

    @pl.when(i == pl.num_programs(1) - 1)
    def _():
        # Per-core partial sum, splatted over one (8,128) vreg (unmasked vst).
        out_ref[...] = jnp.broadcast_to(jnp.sum(acc_ref[...]), out_ref.shape)


def _iou_weighted_kernel(pred_ref, target_ref, w_ref, lsum_ref, wlsum_ref,
                         acc_l_ref, acc_wl_ref, *,
                         row_tile, n_elems, steps_per_core):
    i = pl.program_id(1)

    @pl.when(i == 0)
    def _():
        acc_l_ref[...] = jnp.zeros_like(acc_l_ref)
        acc_wl_ref[...] = jnp.zeros_like(acc_wl_ref)

    loss, valid = _tile_losses(pred_ref, target_ref, row_tile=row_tile,
                               n_elems=n_elems, steps_per_core=steps_per_core)
    w = w_ref[...].astype(jnp.float32)
    loss_m = jnp.where(valid, loss, 0.0)
    acc_wl_ref[...] += jnp.where(valid, loss * w, 0.0)
    # Loss sum only feeds the weight.sum()<=0 fallback: per-step sublane
    # reduce into a (1,128) partial instead of a second full-tile RMW.
    acc_l_ref[...] += jnp.sum(loss_m, axis=0, keepdims=True)

    @pl.when(i == pl.num_programs(1) - 1)
    def _():
        lsum_ref[...] = jnp.broadcast_to(jnp.sum(acc_l_ref[...]), lsum_ref.shape)
        wlsum_ref[...] = jnp.broadcast_to(jnp.sum(acc_wl_ref[...]), wlsum_ref.shape)


def iou_loss(pred, target, weight=None, reduction='mean'):
    """Pallas TPU implementation of IOULoss.forward. pred/target: (N, 4)."""
    assert pred.shape == target.shape
    assert pred.ndim == 2 and pred.shape[1] == 4
    n = pred.shape[0]
    assert n > 0  # mirrors `assert losses.numel() != 0`
    n_elems = 4 * n

    sub = max(_sublane_multiple(pred.dtype), _sublane_multiple(target.dtype))
    rows = pl.cdiv(n_elems, LANE)
    row_tile = min(MAX_ROW_TILE, _round_up(rows, sub))
    num_blocks = pl.cdiv(rows, row_tile)
    num_cores = NUM_TC if num_blocks >= NUM_TC else 1
    steps_per_core = pl.cdiv(num_blocks, num_cores)
    last_blk = num_blocks - 1

    def to_rows(x):
        # Zero-copy reshape of the row-major (N,4) buffer when 4N % 128 == 0;
        # otherwise pad the ragged tail (zeros -> loss 0, and masked anyway).
        flat = x.reshape(-1)
        if rows * LANE != n_elems:
            flat = jnp.pad(flat, (0, rows * LANE - n_elems))
        return flat.reshape(rows, LANE)

    pred2 = to_rows(pred)
    target2 = to_rows(target)

    def box_map(c, i):
        # Clamp so an over-hanging core step re-reads the last block; its
        # contribution is masked out in-kernel via the flat-index bound.
        return (jnp.minimum(c * steps_per_core + i, last_blk), 0)

    grid = (num_cores, steps_per_core)
    box_spec = pl.BlockSpec((row_tile, LANE), box_map)
    # Per-core partial sums: one (8,128) f32 vreg per core.
    part_shape = jax.ShapeDtypeStruct((num_cores, 8, LANE), jnp.float32)
    part_spec = pl.BlockSpec((1, 8, LANE), lambda c, i: (c, 0, 0))
    cparams = pltpu.CompilerParams(
        dimension_semantics=("parallel", "arbitrary"))

    in_bytes = (pred2.size * pred2.dtype.itemsize
                + target2.size * target2.dtype.itemsize)

    if weight is None:
        kern = functools.partial(_iou_sum_kernel, row_tile=row_tile,
                                 n_elems=n_elems, steps_per_core=steps_per_core)
        partials = pl.pallas_call(
            kern,
            out_shape=part_shape,
            grid_spec=pltpu.PrefetchScalarGridSpec(
                num_scalar_prefetch=0,
                grid=grid,
                in_specs=[box_spec, box_spec],
                out_specs=part_spec,
                scratch_shapes=[pltpu.VMEM((row_tile, LANE), jnp.float32)],
            ),
            compiler_params=cparams,
            cost_estimate=pl.CostEstimate(flops=22 * n, transcendentals=2 * n,
                                          bytes_accessed=in_bytes),
        )(pred2, target2)
        total = jnp.sum(partials[:, 0, 0])
        if reduction == 'mean':
            return total / jnp.float32(n)
        return total

    # Weighted path: `weight.sum() > 0` (data-dependent torch branch) resolved
    # with a scalar jnp.where; sum(weight) is a tiny wrapper-side reduce.
    w = weight.reshape(-1).astype(jnp.float32)
    wsum = jnp.sum(w)
    # Expand weight to the interleaved layout (w_j at flat position 4j) so it
    # is lane-aligned with the per-box losses.
    w4 = jnp.pad(w[:, None], ((0, 0), (0, 3))).reshape(-1)
    if rows * LANE != n_elems:
        w4 = jnp.pad(w4, (0, rows * LANE - n_elems))
    w2 = w4.reshape(rows, LANE)

    kern = functools.partial(_iou_weighted_kernel, row_tile=row_tile,
                             n_elems=n_elems, steps_per_core=steps_per_core)
    lsum_p, wlsum_p = pl.pallas_call(
        kern,
        out_shape=(part_shape, part_shape),
        grid_spec=pltpu.PrefetchScalarGridSpec(
            num_scalar_prefetch=0,
            grid=grid,
            in_specs=[box_spec, box_spec, box_spec],
            out_specs=(part_spec, part_spec),
            scratch_shapes=[pltpu.VMEM((1, LANE), jnp.float32),
                            pltpu.VMEM((row_tile, LANE), jnp.float32)],
        ),
        compiler_params=cparams,
        cost_estimate=pl.CostEstimate(flops=26 * n, transcendentals=2 * n,
                                      bytes_accessed=in_bytes + w2.size * 4),
    )(pred2, target2, w2)

    lsum = jnp.sum(lsum_p[:, 0, 0])
    wlsum = jnp.sum(wlsum_p[:, 0, 0])
    unweighted = lsum / jnp.float32(n) if reduction == 'mean' else lsum
    return jnp.where(wsum > 0, wlsum / wsum, unweighted)


def iou_loss_ref(pred, target, weight=None, reduction='mean'):
    """Pure-JAX reference mirroring the PyTorch module."""
    pred = pred.astype(jnp.float32)
    target = target.astype(jnp.float32)
    pl_, pr, pt, pb = pred[:, 0], pred[:, 1], pred[:, 2], pred[:, 3]
    tl, tr, tt, tb = target[:, 0], target[:, 1], target[:, 2], target[:, 3]

    target_area = (tl + tr) * (tt + tb)
    pred_area = (pl_ + pr) * (pt + pb)
    w_intersect = jnp.minimum(pl_, tl) + jnp.minimum(pr, tr)
    h_intersect = jnp.minimum(pb, tb) + jnp.minimum(pt, tt)
    area_intersect = w_intersect * h_intersect
    area_union = target_area + pred_area - area_intersect
    losses = -jnp.log((area_intersect + 1.0) / (area_union + 1.0))

    unweighted = jnp.mean(losses) if reduction == 'mean' else jnp.sum(losses)
    if weight is not None:
        w = weight.reshape(-1).astype(jnp.float32)
        wsum = jnp.sum(w)
        return jnp.where(wsum > 0, jnp.sum(losses * w) / wsum, unweighted)
    return unweighted


if __name__ == "__main__":
    key = jax.random.PRNGKey(0)
    k1, k2, k3 = jax.random.split(key, 3)

    # FCOS-style head: N boxes of (left, right, top, bottom) distances,
    # flattened over batch x spatial (2 x 16 x 16 = 512).
    n = 512
    pred = jax.random.uniform(k1, (n, 4), dtype=jnp.float32, minval=0.0, maxval=8.0)
    target = jax.random.uniform(k2, (n, 4), dtype=jnp.float32, minval=0.0, maxval=8.0)
    weight = jax.random.uniform(k3, (n,), dtype=jnp.float32)

    checks = [
        ('mean', iou_loss(pred, target), iou_loss_ref(pred, target)),
        ('sum', iou_loss(pred, target, reduction='sum'),
         iou_loss_ref(pred, target, reduction='sum')),
        ('weighted', iou_loss(pred, target, weight=weight),
         iou_loss_ref(pred, target, weight=weight)),
    ]

    # Ragged, multi-block path (exercises the 2-TensorCore split, block
    # clamping and the in-kernel tail mask).
    n2 = 70001
    kk1, kk2, kk3 = jax.random.split(jax.random.PRNGKey(1), 3)
    pred2 = jax.random.uniform(kk1, (n2, 4), dtype=jnp.float32, minval=0.0, maxval=8.0)
    target2 = jax.random.uniform(kk2, (n2, 4), dtype=jnp.float32, minval=0.0, maxval=8.0)
    weight2 = jax.random.uniform(kk3, (n2,), dtype=jnp.float32)
    checks += [
        ('big-mean', iou_loss(pred2, target2), iou_loss_ref(pred2, target2)),
        ('big-weighted', iou_loss(pred2, target2, weight=weight2),
         iou_loss_ref(pred2, target2, weight=weight2)),
    ]

    # bf16 streaming path (16-sublane tiles).
    checks.append(('bf16-mean',
                   iou_loss(pred.astype(jnp.bfloat16), target.astype(jnp.bfloat16)),
                   iou_loss_ref(pred.astype(jnp.bfloat16), target.astype(jnp.bfloat16))))

    for name, got, want in checks:
        got = jax.block_until_ready(got)
        assert jnp.allclose(got, want, rtol=1e-3, atol=1e-4), (name, got, want)

    print("KERNEL_OK")
</pallas_src>

<mosaic_0001>
module attributes {stable_mosaic.version = 11 : i64} {
  func.func @_iou_sum_kernel(%arg0: i32, %arg1: i32, %arg2: memref<16x128xf32, #tpu.memory_space<vmem>>, %arg3: memref<16x128xf32, #tpu.memory_space<vmem>>, %arg4: memref<1x8x128xf32, #tpu.memory_space<vmem>>, %arg5: memref<16x128xf32, #tpu.memory_space<vmem>>) attributes {dimension_semantics = [#tpu.dimension_semantics<parallel>, #tpu.dimension_semantics<arbitrary>], iteration_bounds = array<i64: 1, 1>, scalar_prefetch = 0 : i64, scratch_operands = 1 : i64, tpu.core_type = #tpu.core_type<tc>, window_params = [{transform_indices = @transform_0, window_bounds = array<i64: 16, 128>}, {transform_indices = @transform_1, window_bounds = array<i64: 16, 128>}, {transform_indices = @transform_2, window_bounds = array<i64: 1, 8, 128>}]} {
    %c0_i32 = arith.constant 0 : i32
    %0 = arith.cmpi eq, %arg1, %c0_i32 : i32
    %1 = arith.extui %0 : i1 to i32
    %c0_i32_0 = arith.constant 0 : i32
    %2 = arith.cmpi ne, %1, %c0_i32_0 : i32
    scf.if %2 {
      %cst_17 = arith.constant 0.000000e+00 : f32
      %52 = vector.broadcast %cst_17 : f32 to vector<16x128xf32>
      %c0_18 = arith.constant 0 : index
      %c0_19 = arith.constant 0 : index
      %53 = vector.load %arg5[%c0_18, %c0_19] : memref<16x128xf32, #tpu.memory_space<vmem>>, vector<16x128xf32>
      tpu.vector_store %arg5[%c0_18, %c0_19], %52 {strides = array<i32>} : memref<16x128xf32, #tpu.memory_space<vmem>>, vector<16x128xf32>,
    } else {
    }
    %c0 = arith.constant 0 : index
    %c0_1 = arith.constant 0 : index
    %3 = vector.load %arg2[%c0, %c0_1] : memref<16x128xf32, #tpu.memory_space<vmem>>, vector<16x128xf32>
    %c0_2 = arith.constant 0 : index
    %c0_3 = arith.constant 0 : index
    %4 = vector.load %arg3[%c0_2, %c0_3] : memref<16x128xf32, #tpu.memory_space<vmem>>, vector<16x128xf32>
    %5 = arith.minimumf %3, %4 : vector<16x128xf32>
    %c127_i32 = arith.constant 127 : i32
    %6 = tpu.dynamic_rotate %3 by %c127_i32 dim 1 : vector<16x128xf32>, i32 -> vector<16x128xf32>
    %7 = arith.addf %3, %6 : vector<16x128xf32>
    %c127_i32_4 = arith.constant 127 : i32
    %8 = tpu.dynamic_rotate %4 by %c127_i32_4 dim 1 : vector<16x128xf32>, i32 -> vector<16x128xf32>
    %9 = arith.addf %4, %8 : vector<16x128xf32>
    %c127_i32_5 = arith.constant 127 : i32
    %10 = tpu.dynamic_rotate %5 by %c127_i32_5 dim 1 : vector<16x128xf32>, i32 -> vector<16x128xf32>
    %11 = arith.addf %5, %10 : vector<16x128xf32>
    %c126_i32 = arith.constant 126 : i32
    %12 = tpu.dynamic_rotate %7 by %c126_i32 dim 1 : vector<16x128xf32>, i32 -> vector<16x128xf32>
    %13 = arith.mulf %7, %12 : vector<16x128xf32>
    %c126_i32_6 = arith.constant 126 : i32
    %14 = tpu.dynamic_rotate %9 by %c126_i32_6 dim 1 : vector<16x128xf32>, i32 -> vector<16x128xf32>
    %15 = arith.mulf %9, %14 : vector<16x128xf32>
    %c126_i32_7 = arith.constant 126 : i32
    %16 = tpu.dynamic_rotate %11 by %c126_i32_7 dim 1 : vector<16x128xf32>, i32 -> vector<16x128xf32>
    %17 = arith.mulf %11, %16 : vector<16x128xf32>
    %18 = arith.addf %15, %13 : vector<16x128xf32>
    %19 = arith.subf %18, %17 : vector<16x128xf32>
    %cst = arith.constant 1.000000e+00 : f32
    %20 = vector.broadcast %cst : f32 to vector<16x128xf32>
    %21 = arith.addf %19, %20 : vector<16x128xf32>
    %22 = math.log %21 : vector<16x128xf32>
    %cst_8 = arith.constant 1.000000e+00 : f32
    %23 = vector.broadcast %cst_8 : f32 to vector<16x128xf32>
    %24 = arith.addf %17, %23 : vector<16x128xf32>
    %25 = math.log %24 : vector<16x128xf32>
    %26 = arith.subf %22, %25 : vector<16x128xf32>
    %c1_i32 = arith.constant 1 : i32
    %27 = arith.muli %arg0, %c1_i32 : i32
    %28 = arith.addi %27, %arg1 : i32
    %29 = tpu.iota {dimensions = array<i32: 0>} : vector<16x128xi32>
    %30 = tpu.iota {dimensions = array<i32: 1>} : vector<16x128xi32>
    %c16_i32 = arith.constant 16 : i32
    %31 = arith.muli %28, %c16_i32 : i32
    %32 = vector.broadcast %31 : i32 to vector<16x128xi32>
    %33 = arith.addi %32, %29 : vector<16x128xi32>
    %c128_i32 = arith.constant 128 : i32
    %34 = vector.broadcast %c128_i32 : i32 to vector<16x128xi32>
    %35 = arith.muli %33, %34 : vector<16x128xi32>
    %36 = arith.addi %35, %30 : vector<16x128xi32>
    %c3_i32 = arith.constant 3 : i32
    %37 = vector.broadcast %c3_i32 : i32 to vector<16x128xi32>
    %38 = arith.andi %30, %37 : vector<16x128xi32>
    %c0_i32_9 = arith.constant 0 : i32
    %39 = vector.broadcast %c0_i32_9 : i32 to vector<16x128xi32>
    %40 = arith.cmpi eq, %38, %39 : vector<16x128xi32>
    %c2048_i32 = arith.constant 2048 : i32
    %41 = vector.broadcast %c2048_i32 : i32 to vector<16x128xi32>
    %42 = arith.cmpi slt, %36, %41 : vector<16x128xi32>
    %43 = arith.andi %40, %42 : vector<16x128xi1>
    %c0_10 = arith.constant 0 : index
    %c0_11 = arith.constant 0 : index
    %44 = vector.load %arg5[%c0_10, %c0_11] : memref<16x128xf32, #tpu.memory_space<vmem>>, vector<16x128xf32>
    %cst_12 = arith.constant 0.000000e+00 : f32
    %45 = vector.broadcast %cst_12 : f32 to vector<16x128xf32>
    %46 = arith.select %43, %26, %45 : vector<16x128xi1>, vector<16x128xf32>
    %47 = arith.addf %44, %46 : vector<16x128xf32>
    %c0_13 = arith.constant 0 : index
    %c0_14 = arith.constant 0 : index
    %48 = vector.load %arg5[%c0_13, %c0_14] : memref<16x128xf32, #tpu.memory_space<vmem>>, vector<16x128xf32>
    tpu.vector_store %arg5[%c0_13, %c0_14], %47 {strides = array<i32>} : memref<16x128xf32, #tpu.memory_space<vmem>>, vector<16x128xf32>,
    %c0_i32_15 = arith.constant 0 : i32
    %49 = arith.cmpi eq, %arg1, %c0_i32_15 : i32
    %50 = arith.extui %49 : i1 to i32
    %c0_i32_16 = arith.constant 0 : i32
    %51 = arith.cmpi ne, %50, %c0_i32_16 : i32
    scf.if %51 {
      %c0_17 = arith.constant 0 : index
      %c0_18 = arith.constant 0 : index
      %52 = vector.load %arg5[%c0_17, %c0_18] : memref<16x128xf32, #tpu.memory_space<vmem>>, vector<16x128xf32>
      %53 = vector.shape_cast %52 : vector<16x128xf32> to vector<1x16x128xf32>
      %cst_19 = arith.constant dense<0.000000e+00> : vector<1xf32>
      %54 = vector.multi_reduction <add>, %53, %cst_19 [1, 2] : vector<1x16x128xf32> to vector<1xf32>
      %55 = vector.shape_cast %54 : vector<1xf32> to vector<1x1x1xf32>
      %56 = vector.extract %55[0, 0, 0] : f32 from vector<1x1x1xf32>
      %57 = vector.broadcast %56 : f32 to vector<1x8x128xf32>
      %c0_20 = arith.constant 0 : index
      %c0_21 = arith.constant 0 : index
      %c0_22 = arith.constant 0 : index
      %58 = vector.load %arg4[%c0_20, %c0_21, %c0_22] : memref<1x8x128xf32, #tpu.memory_space<vmem>>, vector<1x8x128xf32>
      tpu.vector_store %arg4[%c0_20, %c0_21, %c0_22], %57 {strides = array<i32>} : memref<1x8x128xf32, #tpu.memory_space<vmem>>, vector<1x8x128xf32>,
    } else {
    }
    return
  }
  func.func @transform_0(%arg0: i32, %arg1: i32) -> (i32, i32) {
    %c1_i32 = arith.constant 1 : i32
    %0 = arith.muli %arg0, %c1_i32 : i32
    %1 = arith.addi %0, %arg1 : i32
    %c0_i32 = arith.constant 0 : i32
    %2 = arith.minsi %1, %c0_i32 : i32
    %c0_i32_0 = arith.constant 0 : i32
    %c0_i32_1 = arith.constant 0 : i32
    return %2, %c0_i32_0 : i32, i32
  }
  func.func @transform_1(%arg0: i32, %arg1: i32) -> (i32, i32) {
    %c1_i32 = arith.constant 1 : i32
    %0 = arith.muli %arg0, %c1_i32 : i32
    %1 = arith.addi %0, %arg1 : i32
    %c0_i32 = arith.constant 0 : i32
    %2 = arith.minsi %1, %c0_i32 : i32
    %c0_i32_0 = arith.constant 0 : i32
    %c0_i32_1 = arith.constant 0 : i32
    return %2, %c0_i32_0 : i32, i32
  }
  func.func @transform_2(%arg0: i32, %arg1: i32) -> (i32, i32, i32) {
    %c0_i32 = arith.constant 0 : i32
    %c0_i32_0 = arith.constant 0 : i32
    %c0_i32_1 = arith.constant 0 : i32
    return %arg0, %c0_i32, %c0_i32_0 : i32, i32, i32
  }
}

</mosaic_0001>

<bundles_post_ra>
// kernel: tpu_custom_call.1
= control target key start
LH: loop header
LB: loop body
LE: loop exit
PB: predicated region body
PF: predicated region fallthrough
CT: control target
= control target key end

     0   :  { %7 = vsyncpa [#allocation4], 0  ;;  %s338_s0 = inlined_call_operand.hbm [shape: f32[16,128], index: 0, kind: input, shape index: {}]   ;;  %s339_s1 = inlined_call_operand.hbm [shape: f32[16,128], index: 1, kind: input, shape index: {}]   ;;  %s340_s2 = inlined_call_operand.hbm [shape: f32[1,8,128], index: 2, kind: output, shape index: {}]  }
   0x1   :  { %8 = vsyncpa [#allocation7], 0 }
   0x2   :  { %9 = vsyncpa [#allocation5], 0  ;;  %s280_s9 = smov [#allocation3]   ;;  %s208_s13 = scalar_lea.hbm %s338_s0, 256 }
   0x3   :  { %s21_s10 = sshll.u32 %s280_s9, 4  ;;  %p209_p0 = scmp.ne.s32.totalorder %s338_s0, %s208_s13  ;;  %s22_s10 = int_to_ptr.vmem [resolvable:$true] %s21_s10 }
   0x4   :  { %p212_p1 = scmp.lt.u32.totalorder %s208_s13, %s338_s0 }
   0x6   :  { %p214_p2 = pnand %p212_p1, %p209_p0 }
   0x8   :  { %217 = shalt.err (!%p214_p2)
}
   0x9   :  { %s218_s18 = scalar_lea.vmem %s22_s10, 256  ;;  %p223_p4 = scmp.lt.s32.totalorder %s22_s10, %s22_s10 }
   0xa   :  { %p219_p3 = scmp.ne.s32.totalorder %s22_s10, %s218_s18  ;;  %p224_p5 = scmp.lt.s32.totalorder %s218_s18, %s218_s18 }
   0xc   :  { %p225_p6 = por %p224_p5, %p223_p4 }
   0xe   :  { %p226_p7 = pnand %p225_p6, %p219_p3 }
  0x10   :  { %229 = shalt.err (!%p226_p7)
}
  0x11   :  { %s281_s19 = smov 128   ;;  %s282_s20 = smov 8  }
  0x12   :  { %27 = dma.hbm_to_vmem [thread:$0]  %s338_s0, 256, %s22_s10, [#allocation4], %s281_s19, %s281_s19, %s282_s20  }
  0x13   :  { %s283_s23 = smov [#allocation6]   ;;  %s230_s27 = scalar_lea.hbm %s339_s1, 256 }
  0x14   :  { %s39_s24 = sshll.u32 %s283_s23, 4  ;;  %p231_p8 = scmp.ne.s32.totalorder %s339_s1, %s230_s27  ;;  %s40_s24 = int_to_ptr.vmem [resolvable:$true] %s39_s24 }
  0x15   :  { %p234_p9 = scmp.lt.u32.totalorder %s230_s27, %s339_s1 }
  0x17   :  { %p236_p10 = pnand %p234_p9, %p231_p8 }
  0x19   :  { %239 = shalt.err (!%p236_p10)
}
  0x1a   :  { %s240_s4 = scalar_lea.vmem %s40_s24, 256  ;;  %p245_p12 = scmp.lt.s32.totalorder %s40_s24, %s40_s24 }
  0x1b   :  { %p241_p11 = scmp.ne.s32.totalorder %s40_s24, %s240_s4  ;;  %p246_p13 = scmp.lt.s32.totalorder %s240_s4, %s240_s4 }
  0x1d   :  { %p247_p0 = por %p246_p13, %p245_p12 }
  0x1f   :  { %p248_p1 = pnand %p247_p0, %p241_p11 }
  0x21   :  { %251 = shalt.err (!%p248_p1)
}
  0x22   :  { %45 = dma.hbm_to_vmem [thread:$0]  %s339_s1, 256, %s40_s24, [#allocation7], %s281_s19, %s281_s19, %s282_s20  }
  0x23   :  { %274 = dma.done.wait [#allocation4], 256  }
  0x24   :  { %275 = vsyncadd [#allocation4], 4294967040 }
  0x25   :  { %276 = dma.done.wait [#allocation7], 256  }
  0x26   :  { %277 = vsyncadd [#allocation7], 4294967040  ;;  %v66_v0 = vld [vmem:[#allocation3] sm:$0xff]  ;;  %v68_v1 = vld [vmem:[#allocation6] sm:$0xff]  ;;  %s284_s6 = smov 127   ;;  %s285_s1 = smov 126   ;;  %v127_v28 = vlaneseq }
  0x27   :  { %72 = vrot.lane.b32.xlu0 %v66_v0, %s284_s6  ;;  %78 = vrot.lane.b32.xlu1 %v68_v1, %s284_s6  ;;  %v67_v2 = vld [vmem:[#allocation3 + $0x8] sm:$0xff]  ;;  %v69_v3 = vld [vmem:[#allocation6 + $0x8] sm:$0xff]  ;;  %v70_v4 = vmin.f32 %v66_v0, %v68_v1  ;;  %s286_s7 = smov [#allocation8]  }
  0x28   :  { %v71_v5 = vmin.f32 %v67_v2, %v69_v3  ;;  %v128_v36 = vshrl.u32 %v127_v28, 7  ;;  %v131_v41 = vand.u32 127, %v127_v28  ;;  %s177_s8 = sshll.u32 %s286_s7, 4  ;;  %s178_s8 = int_to_ptr.vmem [resolvable:$true] %s177_s8 }
  0x29   :  { %s252_s10 = scalar_lea.vmem %s178_s8, 128  ;;  %p257_p3 = scmp.lt.s32.totalorder %s178_s8, %s178_s8 }
  0x2a   :  { %v129_v39 = vadd.s32 8, %v128_v36  ;;  %v136_v42 = vmul.u32 128, %v128_v36  ;;  %v140_v45 = vand.u32 3, %v131_v41  ;;  %p253_p2 = scmp.ne.s32.totalorder %s178_s8, %s252_s10  ;;  %p258_p4 = scmp.lt.s32.totalorder %s252_s10, %s252_s10 }
  0x2b   :  { %74 = vrot.lane.b32.xlu0 %v67_v2, %s284_s6  ;;  %80 = vrot.lane.b32.xlu1 %v69_v3, %s284_s6 }
  0x2c   :  { %v137_v43 = vmul.u32 128, %v129_v39  ;;  %v138_v44 = vadd.s32 %v136_v42, %v131_v41  ;;  %vm141_vm0 = vcmp.eq.s32.totalorder %v140_v45, 0  ;;  %p259_p5 = por %p258_p4, %p257_p3 }
  0x2e   :  { %v139_v47 = vadd.s32 %v137_v43, %v131_v41  ;;  %vm142_vm1 = vcmp.lt.s32.totalorder %v138_v44, 2048  ;;  %p260_p6 = pnand %p259_p5, %p253_p2 }
  0x2f   :  { %84 = vrot.lane.b32.xlu0 %v70_v4, %s284_s6  ;;  %86 = vrot.lane.b32.xlu1 %v71_v5, %s284_s6  ;;  %vm144_vm3 = vmand %vm141_vm0, %vm142_vm1 }
  0x30   :  { %vm143_vm2 = vcmp.lt.s32.totalorder %v139_v47, 2048 }
  0x31   :  { %vm145_vm4 = vmand %vm141_vm0, %vm143_vm2 }
  0x99   :  { %v73_v6 = vpop.permute.xlu0 %72  ;;  %v79_v7 = vpop.permute.xlu1 %78 }
  0x9a   :  { %v76_v8 = vadd.f32 %v73_v6, %v66_v0  ;;  %v82_v9 = vadd.f32 %v79_v7, %v68_v1 }
  0x9c   :  { %90 = vrot.lane.b32.xlu0 %v76_v8, %s285_s1 }
  0x9d   :  { %v75_v10 = vpop.permute.xlu0 %74  ;;  %v81_v11 = vpop.permute.xlu1 %80 }
  0x9e   :  { %v77_v12 = vadd.f32 %v75_v10, %v67_v2  ;;  %v83_v13 = vadd.f32 %v81_v11, %v69_v3 }
  0xa0   :  { %92 = vrot.lane.b32.xlu1 %v77_v12, %s285_s1  ;;  %96 = vrot.lane.b32.xlu0 %v82_v9, %s285_s1 }
  0xa1   :  { %v85_v14 = vpop.permute.xlu0 %84  ;;  %v87_v15 = vpop.permute.xlu1 %86 }
  0xa2   :  { %v88_v16 = vadd.f32 %v85_v14, %v70_v4  ;;  %v89_v17 = vadd.f32 %v87_v15, %v71_v5 }
  0xa4   :  { %98 = vrot.lane.b32.xlu1 %v83_v13, %s285_s1  ;;  %102 = vrot.lane.b32.xlu0 %v88_v16, %s285_s1 }
  0xa8   :  { %104 = vrot.lane.b32.xlu1 %v89_v17, %s285_s1 }
 0x10e   :  { %v91_v18 = vpop.permute.xlu0 %90 }
 0x10f   :  { %v94_v22 = vmul.f32 %v91_v18, %v76_v8 }
 0x112   :  { %v93_v19 = vpop.permute.xlu1 %92  ;;  %v97_v20 = vpop.permute.xlu0 %96 }
 0x113   :  { %v100_v21 = vmul.f32 %v97_v20, %v82_v9  ;;  %v95_v29 = vmul.f32 %v93_v19, %v77_v12 }
 0x115   :  { %v108_v25 = vadd.f32 %v100_v21, %v94_v22 }
 0x116   :  { %v99_v23 = vpop.permute.xlu1 %98  ;;  %v103_v24 = vpop.permute.xlu0 %102 }
 0x117   :  { %v101_v26 = vmul.f32 %v99_v23, %v83_v13  ;;  %v106_v27 = vmul.f32 %v103_v24, %v88_v16 }
 0x119   :  { %v110_v30 = vsub.f32 %v108_v25, %v106_v27  ;;  %v118_v31 = vadd.f32 1.0, %v106_v27  ;;  %v109_v33 = vadd.f32 %v101_v26, %v95_v29 }
 0x11a   :  { %v105_v32 = vpop.permute.xlu1 %104 }
 0x11b   :  { %v112_v34 = vadd.f32 1.0, %v110_v30  ;;  %v107_v35 = vmul.f32 %v105_v32, %v89_v17  ;;  %200 = vlog2.f32 %v118_v31 }
 0x11d   :  { %202 = vlog2.f32 %v112_v34  ;;  %v111_v37 = vsub.f32 %v109_v33, %v107_v35  ;;  %v119_v38 = vadd.f32 1.0, %v107_v35 }
 0x11f   :  { %v113_v40 = vadd.f32 1.0, %v111_v37  ;;  %204 = vlog2.f32 %v119_v38 }
 0x121   :  { %206 = vlog2.f32 %v113_v40 }
 0x125   :  { %v201_v46 = vpop.eup %200 }
 0x126   :  { %v121_v51 = vmul.f32 0.6931472, %v201_v46 }
 0x127   :  { %v203_v48 = vpop.eup %202 }
 0x128   :  { %v115_v49 = vmul.f32 0.6931472, %v203_v48 }
 0x129   :  { %v205_v50 = vpop.eup %204 }
 0x12a   :  { %v123_v54 = vmul.f32 0.6931472, %v205_v50  ;;  %v124_v55 = vsub.f32 %v115_v49, %v121_v51 }
 0x12b   :  { %v207_v52 = vpop.eup %206 }
 0x12c   :  { %v117_v53 = vmul.f32 0.6931472, %v207_v52  ;;  %v148_v57 = vsel %vm144_vm3, %v124_v55, 0.0 }
 0x12e   :  { %v125_v56 = vsub.f32 %v117_v53, %v123_v54 }
 0x130   :  { %v149_v58 = vsel %vm145_vm4, %v125_v56, 0.0 }
 0x131   :  { %v159_v59 = vadd.f32 %v149_v58, %v148_v57 }
 0x133   :  { %160 = vadd.xlane.f32.xlu0 %v159_v59 }
 0x1c0   :  { %v161_v60 = vpop.xlane.xlu0 %160 }
 0x1c1   :  { %v162_v61 = vrot.slane %v161_v60, 4 }
 0x1c3   :  { %v163_v62 = vadd.f32 %v162_v61, %v161_v60 }
 0x1c5   :  { %v164_v63 = vrot.slane %v163_v62, 2 }
 0x1c7   :  { %v165_v0 = vadd.f32 %v164_v63, %v163_v62 }
 0x1c9   :  { %v166_v1 = vrot.slane %v165_v0, 1 }
 0x1cb   :  { %v167_v2 = vadd.f32 %v166_v1, %v165_v0 }
 0x1cd   :  { %191 = vpush %v167_v2 }
 0x1fe   :  { %s192_s9 = spop %191 }
 0x1ff   :  { %v169_v3 = vstv %s192_s9 }
 0x200   :  { %170 = vst [vmem:[#allocation8] sm:$0xff] %v169_v3 }
 0x201   :  { %263 = shalt.err (!%p260_p6)
}
 0x202   :  { %s264_s13 = scalar_lea.hbm %s340_s2, 128 }
 0x203   :  { %p265_p7 = scmp.ne.s32.totalorder %s340_s2, %s264_s13  ;;  %p268_p8 = scmp.lt.u32.totalorder %s264_s13, %s340_s2 }
 0x205   :  { %p270_p9 = pnand %p268_p8, %p265_p7 }
 0x207   :  { %273 = shalt.err (!%p270_p9)
}
 0x208   :  { %180 = dma.vmem_to_hbm [thread:$0]  %s178_s8, 128, %s340_s2, [#allocation5]  }
 0x209   :  { %278 = dma.done.wait [#allocation5], 128  }
 0x20a   :  { %279 = vsyncadd [#allocation5], 4294967168 }
 0x20b   :  { %184 = vsyncpa [#allocation4], 1 }
 0x20c   :  { %185 = vsyncpa [#allocation7], 1 }
 0x20d   :  { %186 = vsyncpa [#allocation5], 1 }

</bundles_post_ra>
